<compile_context>
chip_gen: v7x
topology: tpu7x:2x2x1
jax: 0.10.0
libtpu: 0.0.40
codegen_flags: <defaults>
</compile_context>

<pallas_src>
import jax
import jax.numpy as jnp
from jax.experimental import pallas as pl
from jax.experimental.pallas import tpu as pltpu


_NEG_INF = -1e30


def _round_up(x, m):
    return ((x + m - 1) // m) * m


def _tpu_vmem_capacity_bytes():
    try:
        return int(pltpu.get_tpu_info().vmem_capacity_bytes)
    except Exception:
        return 64 << 20          # conservative fallback (v7x per-TC VMEM)


def _tpu_kind():
    try:
        return jax.devices()[0].device_kind.lower()
    except Exception:
        return ""


# ----------------------------- Pallas kernel ---------------------------------
def _linear_logsoftmax_kernel(x_ref, w_ref, b_ref, o_ref, m_ref, l_ref):
    """Tiled y = log_softmax(x @ W + b, axis=-1), online softmax over vocab.

    Grid = (row tiles [parallel], vocab tiles [arbitrary, last/innermost]).
    The (tn, Vp) output block is VMEM-resident across the vocab axis and is
    used directly as the logits slab; m_ref / l_ref hold the running max and
    sum-exp (f32).  The finalize at the last vocab tile is one subtract pass.
    """
    j = pl.program_id(1)
    nvt = pl.num_programs(1)
    tv = w_ref.shape[1]

    @pl.when(j == 0)
    def _():
        m_ref[...] = jnp.full_like(m_ref, -jnp.inf)
        l_ref[...] = jnp.zeros_like(l_ref)

    # bf16 operands -> MXU, f32 accumulation; bias add in f32.  Padded vocab
    # columns carry a -1e30 bias so they never win the max / contribute to l.
    logits = jnp.dot(x_ref[...], w_ref[...],
                     preferred_element_type=jnp.float32) + b_ref[...]

    # Online softmax statistics (all f32).
    m_old = m_ref[...]
    m_new = jnp.maximum(m_old, jnp.max(logits, axis=-1, keepdims=True))
    alpha = jnp.exp(m_old - m_new)
    l_ref[...] = alpha * l_ref[...] + jnp.sum(jnp.exp(logits - m_new),
                                              axis=-1, keepdims=True)
    m_ref[...] = m_new

    # Stash raw logits into the resident output slab (lane-dense, tv % 128 == 0).
    col = pl.multiple_of(j * tv, tv)
    o_ref[:, pl.ds(col, tv)] = logits.astype(o_ref.dtype)

    @pl.when(j == nvt - 1)
    def _():
        norm = m_ref[...] + jnp.log(l_ref[...])            # (tn, 1) f32
        o_ref[...] = (o_ref[...].astype(jnp.float32) - norm).astype(o_ref.dtype)


# ----------------------------- Tiling plan ------------------------------------
def plan_mlm_tiles(N, H, V, *, tn=None, tv=None, out_dtype=jnp.float32):
    """Generation-aware tile / VMEM plan for the fused linear+log-softmax."""
    kind = _tpu_kind()
    vmem_cap = _tpu_vmem_capacity_bytes()
    # Headroom for Mosaic internal scratch / semaphores.
    vmem_budget = max(vmem_cap - (10 << 20), 16 << 20)
    out_itemsize = jnp.dtype(out_dtype).itemsize

    # Row tile: arithmetic intensity on the streamed weight tiles is exactly
    # tn FLOP/byte.  Targets: ~512 (v6e, ~650 FLOP/B roofline), ~256 (v5e ~240,
    # v7x ~310 / unknown).
    if tn is None:
        tn = 512 if "v6" in kind else 256
    assert tn % 8 == 0, "row tile must be a multiple of 8 (sublanes)"
    tn = min(tn, _round_up(N, 8))

    # Vocab tile: large lane-dense weight DMAs, but avoid excessive padding
    # when rounding Vp up to a multiple of tv (<= ~6% overhead).
    Vp128 = _round_up(V, 128)
    if tv is None:
        tv = 4096 if vmem_cap >= (100 << 20) else 2048
        tv = min(tv, Vp128)
        while tv > 128 and (_round_up(Vp128, tv) - Vp128) * 16 > Vp128:
            tv = max(128, (tv // 2) // 128 * 128)
    assert tv % 128 == 0, "vocab tile must be a multiple of 128 (lanes)"
    Vp = _round_up(Vp128, tv)

    def kernel_vmem_bytes(tn_, tv_, vp_):
        return (2 * tn_ * vp_ * out_itemsize   # output slab (double-buffered)
                + 2 * tn_ * H * 2              # activation tiles (bf16)
                + 2 * H * tv_ * 2              # weight tiles (bf16)
                + 2 * tv_ * 4                  # bias tiles (f32)
                + 2 * tn_ * 4 * 2)             # m / l scratch (f32)

    # Shrink tn, then tv, until the hot footprint fits the budget.
    while tn > 8 and kernel_vmem_bytes(tn, tv, Vp) > vmem_budget:
        tn = max(8, _round_up(tn // 2, 8))
    while tv > 128 and kernel_vmem_bytes(tn, tv, Vp) > vmem_budget:
        tv = max(128, (tv // 2) // 128 * 128)
        Vp = _round_up(Vp128, tv)

    Np = _round_up(N, tn)
    need = kernel_vmem_bytes(tn, tv, Vp)
    vmem_limit = int(min(max(need + (4 << 20), 16 << 20), vmem_cap - (8 << 20)))

    return dict(tn=tn, tv=tv, Np=Np, Vp=Vp, vmem_limit=vmem_limit,
                out_dtype=out_dtype)


def prepare_mlm_head(w, b, plan):
    """One-time cast+pad of the MLM head (hoisted out of the forward path)."""
    H, V = w.shape
    Vp = plan["Vp"]
    w_p = jnp.pad(w.astype(jnp.bfloat16), ((0, 0), (0, Vp - V)))
    b_p = jnp.pad(b.astype(jnp.float32), (0, Vp - V),
                  constant_values=_NEG_INF).reshape(1, Vp)
    return w_p, b_p


# ----------------------------- Wrapper ----------------------------------------
def linear_logsoftmax(x2d, w_p, b_p, V, plan):
    """x2d: [N, H], w_p: bf16 [H, Vp], b_p: f32 [1, Vp] (padded with -1e30)."""
    N, H = x2d.shape
    tn, tv, Np, Vp = plan["tn"], plan["tv"], plan["Np"], plan["Vp"]
    out_dtype = plan["out_dtype"]
    assert w_p.shape == (H, Vp) and b_p.shape == (1, Vp)

    x_p = x2d.astype(jnp.bfloat16)
    if Np != N:
        x_p = jnp.pad(x_p, ((0, Np - N), (0, 0)))

    grid = (Np // tn, Vp // tv)
    out_itemsize = jnp.dtype(out_dtype).itemsize

    cost = pl.CostEstimate(
        flops=2 * Np * H * Vp + 5 * Np * Vp,
        transcendentals=Np * Vp + Np,
        bytes_accessed=(x_p.size * 2
                        + (Np // tn) * (w_p.size * 2 + b_p.size * 4)
                        + Np * Vp * out_itemsize),
    )

    out = pl.pallas_call(
        _linear_logsoftmax_kernel,
        out_shape=jax.ShapeDtypeStruct((Np, Vp), out_dtype),
        grid_spec=pltpu.PrefetchScalarGridSpec(
            num_scalar_prefetch=0,
            grid=grid,
            in_specs=[
                pl.BlockSpec((tn, H), lambda i, j: (i, 0)),   # activations
                pl.BlockSpec((H, tv), lambda i, j: (0, j)),   # weight tile
                pl.BlockSpec((1, tv), lambda i, j: (0, j)),   # bias tile
            ],
            out_specs=pl.BlockSpec((tn, Vp), lambda i, j: (i, 0)),  # row slab
            scratch_shapes=[pltpu.VMEM((tn, 1), jnp.float32),   # running max
                            pltpu.VMEM((tn, 1), jnp.float32)],  # running sumexp
        ),
        compiler_params=pltpu.CompilerParams(
            dimension_semantics=("parallel", "arbitrary"),
            vmem_limit_bytes=plan["vmem_limit"]),
        cost_estimate=cost,
    )(x_p, w_p, b_p)

    if Np != N or Vp != V:
        # TODO(synk): fuse the consumer (loss gather) so this slice of the
        #             padded [Np, Vp] slab never materializes at large N.
        out = out[:N, :V]
    return out


# ----------------------------- Parameter setup --------------------------------
def init_params(key, vocab_size, hidden, max_seq):
    ks = jax.random.split(key, 8)
    s = 0.02
    return {
        # bert stub embeddings + mixer
        "tok_emb": s * jax.random.normal(ks[0], (vocab_size, hidden), jnp.float32),
        "seg_emb": s * jax.random.normal(ks[1], (3, hidden), jnp.float32),
        "pos_emb": s * jax.random.normal(ks[2], (max_seq, hidden), jnp.float32),
        "mix_w": s * jax.random.normal(ks[3], (hidden, hidden), jnp.float32),
        "mix_b": jnp.zeros((hidden,), jnp.float32),
        # NextSentencePrediction head: Linear(hidden, 2)  (stored as [hidden, 2])
        "nsp_w": s * jax.random.normal(ks[4], (hidden, 2), jnp.float32),
        "nsp_b": s * jax.random.normal(ks[5], (2,), jnp.float32),
        # MaskedLanguageModel head: Linear(hidden, vocab)  (stored as [hidden, vocab])
        "mlm_w": s * jax.random.normal(ks[6], (hidden, vocab_size), jnp.float32),
        "mlm_b": s * jax.random.normal(ks[7], (vocab_size,), jnp.float32),
    }


# ----------------------------- Forward pass -----------------------------------
def bert_stub(params, x_ids, segment_label):
    """Deterministic stand-in for the external BERT encoder. Returns [B, S, H]."""
    B, S = x_ids.shape
    h = (params["tok_emb"][x_ids]
         + params["seg_emb"][segment_label]
         + params["pos_emb"][:S][None, :, :])
    h = jnp.tanh(h @ params["mix_w"] + params["mix_b"])
    return h


def bertlm_forward(params, mlm_w_p, mlm_b_p, x_ids, segment_label, plan):
    """Returns (next_sentence_log_probs [B, 2], mask_lm_log_probs [B, S, V])."""
    B, S = x_ids.shape
    h = bert_stub(params, x_ids, segment_label)            # [B, S, H]
    H = h.shape[-1]
    V = params["mlm_w"].shape[1]

    # NextSentencePrediction: 2 output classes -> plain JAX (Pallas would be
    # pure launch overhead with 2/128 live lanes).
    nsp_logits = h[:, 0, :] @ params["nsp_w"] + params["nsp_b"]
    nsp = jax.nn.log_softmax(nsp_logits, axis=-1)           # [B, 2]

    # MaskedLanguageModel: fused tiled Linear + online LogSoftmax Pallas kernel.
    mlm_flat = linear_logsoftmax(h.reshape(B * S, H), mlm_w_p, mlm_b_p, V, plan)
    return nsp, mlm_flat.reshape(B, S, V)


# ----------------------------- Reference (plain JAX) ---------------------------
def _ref_forward(params, x_ids, segment_label):
    h = bert_stub(params, x_ids, segment_label)
    B, S, H = h.shape
    V = params["mlm_w"].shape[1]
    nsp_logits = h[:, 0, :] @ params["nsp_w"] + params["nsp_b"]
    # MLM reference uses the same bf16-cast operands as the kernel path.
    xb = h.reshape(B * S, H).astype(jnp.bfloat16).astype(jnp.float32)
    wb = params["mlm_w"].astype(jnp.bfloat16).astype(jnp.float32)
    mlm_logits = xb @ wb + params["mlm_b"].astype(jnp.float32)
    return (jax.nn.log_softmax(nsp_logits, axis=-1),
            jax.nn.log_softmax(mlm_logits, axis=-1).reshape(B, S, V))


# ----------------------------- Main --------------------------------------------
if __name__ == "__main__":
    # Small shapes, but chosen (with tn=8, tv=128) so the kernel exercises a
    # real 2 (row, parallel) x 4 (vocab, arbitrary) grid with the online
    # softmax recombination across vocab tiles.  At production shapes, leave
    # tn/tv=None for the generation-aware defaults.
    B, S, H, V = 2, 8, 32, 512
    key = jax.random.PRNGKey(0)
    k_param, k_x, k_seg = jax.random.split(key, 3)

    params = init_params(k_param, vocab_size=V, hidden=H, max_seq=S)
    x_ids = jax.random.randint(k_x, (B, S), 0, V, dtype=jnp.int32)
    segment_label = jax.random.randint(k_seg, (B, S), 0, 2, dtype=jnp.int32)

    plan = plan_mlm_tiles(B * S, H, V, tn=8, tv=128, out_dtype=jnp.float32)
    mlm_w_p, mlm_b_p = prepare_mlm_head(params["mlm_w"], params["mlm_b"], plan)

    nsp_out, mlm_out = bertlm_forward(params, mlm_w_p, mlm_b_p,
                                      x_ids, segment_label, plan)
    nsp_out = jax.block_until_ready(nsp_out)
    mlm_out = jax.block_until_ready(mlm_out)

    # correctness check against pure-JAX reference
    nsp_ref, mlm_ref = _ref_forward(params, x_ids, segment_label)
    assert nsp_out.shape == (B, 2) and mlm_out.shape == (B, S, V)
    assert jnp.allclose(nsp_out, nsp_ref, atol=1e-5, rtol=1e-5)
    assert jnp.allclose(mlm_out, mlm_ref, atol=2e-3, rtol=2e-3), \
        float(jnp.max(jnp.abs(mlm_out - mlm_ref)))

    print("KERNEL_OK")
</pallas_src>

<mosaic_0001>
module attributes {stable_mosaic.version = 11 : i64} {
  func.func @_linear_logsoftmax_kernel(%arg0: i32, %arg1: i32, %arg2: memref<8x32xbf16, #tpu.memory_space<vmem>>, %arg3: memref<32x128xbf16, #tpu.memory_space<vmem>>, %arg4: memref<1x128xf32, #tpu.memory_space<vmem>>, %arg5: memref<8x512xf32, #tpu.memory_space<vmem>>, %arg6: memref<8x1xf32, #tpu.memory_space<vmem>>, %arg7: memref<8x1xf32, #tpu.memory_space<vmem>>) attributes {dimension_semantics = [#tpu.dimension_semantics<parallel>, #tpu.dimension_semantics<arbitrary>], iteration_bounds = array<i64: 2, 4>, scalar_prefetch = 0 : i64, scratch_operands = 2 : i64, tpu.core_type = #tpu.core_type<tc>, window_params = [{transform_indices = @transform_0, window_bounds = array<i64: 8, 32>}, {transform_indices = @transform_1, window_bounds = array<i64: 32, 128>}, {transform_indices = @transform_2, window_bounds = array<i64: 1, 128>}, {transform_indices = @transform_3, window_bounds = array<i64: 8, 512>}]} {
    %c0_i32 = arith.constant 0 : i32
    %0 = arith.cmpi eq, %arg1, %c0_i32 : i32
    %1 = arith.extui %0 : i1 to i32
    %c0_i32_0 = arith.constant 0 : i32
    %2 = arith.cmpi ne, %1, %c0_i32_0 : i32
    scf.if %2 {
      %cst_18 = arith.constant 0xFF800000 : f32
      %32 = vector.broadcast %cst_18 : f32 to vector<8x1xf32>
      %c0_19 = arith.constant 0 : index
      %c0_20 = arith.constant 0 : index
      %33 = vector.load %arg6[%c0_19, %c0_20] : memref<8x1xf32, #tpu.memory_space<vmem>>, vector<8x1xf32>
      tpu.vector_store %arg6[%c0_19, %c0_20], %32 {strides = array<i32>} : memref<8x1xf32, #tpu.memory_space<vmem>>, vector<8x1xf32>,
      %cst_21 = arith.constant 0.000000e+00 : f32
      %34 = vector.broadcast %cst_21 : f32 to vector<8x1xf32>
      %c0_22 = arith.constant 0 : index
      %c0_23 = arith.constant 0 : index
      %35 = vector.load %arg7[%c0_22, %c0_23] : memref<8x1xf32, #tpu.memory_space<vmem>>, vector<8x1xf32>
      tpu.vector_store %arg7[%c0_22, %c0_23], %34 {strides = array<i32>} : memref<8x1xf32, #tpu.memory_space<vmem>>, vector<8x1xf32>,
    } else {
    }
    %c0 = arith.constant 0 : index
    %c0_1 = arith.constant 0 : index
    %3 = vector.load %arg2[%c0, %c0_1] : memref<8x32xbf16, #tpu.memory_space<vmem>>, vector<8x32xbf16>
    %c0_2 = arith.constant 0 : index
    %c0_3 = arith.constant 0 : index
    %4 = vector.load %arg3[%c0_2, %c0_3] : memref<32x128xbf16, #tpu.memory_space<vmem>>, vector<32x128xbf16>
    %cst = arith.constant dense<0.000000e+00> : vector<8x128xf32>
    %5 = tpu.matmul %3, %4, %cst {dimension_numbers = #tpu.dot_dimension_numbers<[1], [0], [0], [1], [0, 0, 1, 1], [], []>} : vector<8x32xbf16>, vector<32x128xbf16>, vector<8x128xf32> -> vector<8x128xf32>
    %c0_4 = arith.constant 0 : index
    %c0_5 = arith.constant 0 : index
    %6 = vector.load %arg4[%c0_4, %c0_5] : memref<1x128xf32, #tpu.memory_space<vmem>>, vector<1x128xf32>
    %7 = vector.broadcast %6 : vector<1x128xf32> to vector<8x128xf32>
    %8 = arith.addf %5, %7 : vector<8x128xf32>
    %c0_6 = arith.constant 0 : index
    %c0_7 = arith.constant 0 : index
    %9 = vector.load %arg6[%c0_6, %c0_7] : memref<8x1xf32, #tpu.memory_space<vmem>>, vector<8x1xf32>
    %cst_8 = arith.constant dense<0xFF800000> : vector<8xf32>
    %10 = vector.multi_reduction <maximumf>, %8, %cst_8 [1] : vector<8x128xf32> to vector<8xf32>
    %11 = vector.shape_cast %10 : vector<8xf32> to vector<8x1xf32>
    %12 = arith.maximumf %9, %11 : vector<8x1xf32>
    %13 = arith.subf %9, %12 : vector<8x1xf32>
    %14 = math.exp %13 : vector<8x1xf32>
    %c0_9 = arith.constant 0 : index
    %c0_10 = arith.constant 0 : index
    %15 = vector.load %arg7[%c0_9, %c0_10] : memref<8x1xf32, #tpu.memory_space<vmem>>, vector<8x1xf32>
    %16 = arith.mulf %14, %15 : vector<8x1xf32>
    %17 = vector.broadcast %12 : vector<8x1xf32> to vector<8x128xf32>
    %18 = arith.subf %8, %17 : vector<8x128xf32>
    %19 = math.exp %18 : vector<8x128xf32>
    %cst_11 = arith.constant dense<0.000000e+00> : vector<8xf32>
    %20 = vector.multi_reduction <add>, %19, %cst_11 [1] : vector<8x128xf32> to vector<8xf32>
    %21 = vector.shape_cast %20 : vector<8xf32> to vector<8x1xf32>
    %22 = arith.addf %16, %21 : vector<8x1xf32>
    %c0_12 = arith.constant 0 : index
    %c0_13 = arith.constant 0 : index
    %23 = vector.load %arg7[%c0_12, %c0_13] : memref<8x1xf32, #tpu.memory_space<vmem>>, vector<8x1xf32>
    tpu.vector_store %arg7[%c0_12, %c0_13], %22 {strides = array<i32>} : memref<8x1xf32, #tpu.memory_space<vmem>>, vector<8x1xf32>,
    %c0_14 = arith.constant 0 : index
    %c0_15 = arith.constant 0 : index
    %24 = vector.load %arg6[%c0_14, %c0_15] : memref<8x1xf32, #tpu.memory_space<vmem>>, vector<8x1xf32>
    tpu.vector_store %arg6[%c0_14, %c0_15], %12 {strides = array<i32>} : memref<8x1xf32, #tpu.memory_space<vmem>>, vector<8x1xf32>,
    %c128_i32 = arith.constant 128 : i32
    %25 = arith.muli %arg1, %c128_i32 : i32
    %26 = tpu.assume_multiple %25, 128 : i32
    %c0_16 = arith.constant 0 : index
    %27 = arith.index_cast %26 : i32 to index
    %28 = vector.load %arg5[%c0_16, %27] : memref<8x512xf32, #tpu.memory_space<vmem>>, vector<8x128xf32>
    tpu.vector_store %arg5[%c0_16, %27], %8 {strides = array<i32>} : memref<8x512xf32, #tpu.memory_space<vmem>>, vector<8x128xf32>,
    %c3_i32 = arith.constant 3 : i32
    %29 = arith.cmpi eq, %arg1, %c3_i32 : i32
    %30 = arith.extui %29 : i1 to i32
    %c0_i32_17 = arith.constant 0 : i32
    %31 = arith.cmpi ne, %30, %c0_i32_17 : i32
    scf.if %31 {
      %c0_18 = arith.constant 0 : index
      %c0_19 = arith.constant 0 : index
      %32 = vector.load %arg6[%c0_18, %c0_19] : memref<8x1xf32, #tpu.memory_space<vmem>>, vector<8x1xf32>
      %c0_20 = arith.constant 0 : index
      %c0_21 = arith.constant 0 : index
      %33 = vector.load %arg7[%c0_20, %c0_21] : memref<8x1xf32, #tpu.memory_space<vmem>>, vector<8x1xf32>
      %34 = math.log %33 : vector<8x1xf32>
      %35 = arith.addf %32, %34 : vector<8x1xf32>
      %c0_22 = arith.constant 0 : index
      %c0_23 = arith.constant 0 : index
      %36 = vector.load %arg5[%c0_22, %c0_23] : memref<8x512xf32, #tpu.memory_space<vmem>>, vector<8x512xf32>
      %37 = vector.broadcast %35 : vector<8x1xf32> to vector<8x512xf32>
      %38 = arith.subf %36, %37 : vector<8x512xf32>
      %c0_24 = arith.constant 0 : index
      %c0_25 = arith.constant 0 : index
      %39 = vector.load %arg5[%c0_24, %c0_25] : memref<8x512xf32, #tpu.memory_space<vmem>>, vector<8x512xf32>
      tpu.vector_store %arg5[%c0_24, %c0_25], %38 {strides = array<i32>} : memref<8x512xf32, #tpu.memory_space<vmem>>, vector<8x512xf32>,
    } else {
    }
    return
  }
  func.func @transform_0(%arg0: i32, %arg1: i32) -> (i32, i32) {
    %c0_i32 = arith.constant 0 : i32
    %c0_i32_0 = arith.constant 0 : i32
    return %arg0, %c0_i32 : i32, i32
  }
  func.func @transform_1(%arg0: i32, %arg1: i32) -> (i32, i32) {
    %c0_i32 = arith.constant 0 : i32
    %c0_i32_0 = arith.constant 0 : i32
    return %c0_i32, %arg1 : i32, i32
  }
  func.func @transform_2(%arg0: i32, %arg1: i32) -> (i32, i32) {
    %c0_i32 = arith.constant 0 : i32
    %c0_i32_0 = arith.constant 0 : i32
    return %c0_i32, %arg1 : i32, i32
  }
  func.func @transform_3(%arg0: i32, %arg1: i32) -> (i32, i32) {
    %c0_i32 = arith.constant 0 : i32
    %c0_i32_0 = arith.constant 0 : i32
    return %arg0, %c0_i32 : i32, i32
  }
}

</mosaic_0001>

<bundles_post_ra>
// kernel: tpu_custom_call.1
= control target key start
LH: loop header
LB: loop body
LE: loop exit
PB: predicated region body
PF: predicated region fallthrough
CT: control target
= control target key end

     0   :  { %s1223_s0 = inlined_call_operand.hbm [shape: bf16[16,32], index: 0, kind: input, shape index: {}]   ;;  %s1224_s1 = inlined_call_operand.hbm [shape: bf16[32,512], index: 1, kind: input, shape index: {}]   ;;  %s1225_s2 = inlined_call_operand.vmem [shape: f32[1,512], index: 2, kind: input, shape index: {}]   ;;  %s1226_s3 = inlined_call_operand.hbm [shape: f32[16,512], index: 3, kind: output, shape index: {}]  }
   0x1   :  { %1235 = sst [smem:[#allocation17_spill]] %s1223_s0 }
   0x2   :  { %8 = vsyncpa [#allocation5], 0 }
   0x3   :  { %10 = vsyncpa [#allocation5 + $0x1], 0 }
   0x4   :  { %11 = vsyncpa [#allocation8], 0 }
   0x5   :  { %13 = vsyncpa [#allocation8 + $0x1], 0 }
   0x6   :  { %14 = vsyncpa [#allocation6], 0 }
   0x7   :  { %16 = vsyncpa [#allocation6 + $0x1], 0  ;;  %s895_s12 = smov 0   ;;  %s897_s13 = smov 0  }
   0x8   :  { %s899_s14 = smov 0   ;;  %s901_s15 = smov 0  }
   0x9   :  { %s903_s16 = smov 0   ;;  %s905_s17 = smov 0  }
   0xa   :  { %s907_s18 = smov 0   ;;  %s909_s19 = smov 0  }
   0xb   :  { %s911_s20 = smov 0   ;;  %s913_s21 = smov 0  }
   0xc   :  { %s915_s22 = smov 0  }
   0xd LB: > { %1236 = sst [smem:[#allocation13_spill]] %s853_s20  ;;  %s512_s23 = sadd.s32 4294967295, %s861_s22   ;;  %s861_s22 = sphi %s915_s22, %s22_s22   ;;  %s857_s21 = sphi %s913_s21, %s1260_s21   ;;  %s853_s20 = sphi %s911_s20, %s1259_s20   ;;  %s849_s19 = sphi %s909_s19, %s1258_s19   ;;  %s845_s18 = sphi %s907_s18, %s1257_s18   ;;  %s841_s17 = sphi %s905_s17, %s1266_s17   ;;  %s837_s16 = sphi %s903_s16, %s1265_s16   ;;  %s833_s15 = sphi %s901_s15, %s1264_s15   ;;  %s829_s14 = sphi %s899_s14, %s1263_s14   ;;  %s825_s13 = sphi %s897_s13, %s1262_s13   ;;  %s821_s12 = sphi %s895_s12, %s1261_s12  }
   0xe   : > { %1237 = sst [smem:[#allocation14_spill]] %s857_s21  ;;  %s513_s24 = sadd.s32 4294967294, %s861_s22  }
   0xf   : > { %s31_s25 = sadd.s32 1, %s853_s20  ;;  %s34_s26 = sadd.s32 1, %s857_s21 }
  0x10   : > { %p32_p0 = scmp.ge.s32.totalorder %s31_s25, 4  ;;  %s41_s27 = sadd.s32 1, %s841_s17 }
  0x11   : > { %p48_p1 = scmp.ne.s32.totalorder %s841_s17, %s837_s16  ;;  %p49_p2 = scmp.eq.s32.totalorder %s861_s22, 0 }
  0x12   : > { %s1268_s25 = smov (%p32_p0, %s31_s25), 0  ;;  %s1270_s26 = smov (!%p32_p0, %s34_s26), %s857_s21 }
  0x13   : > { %1238 = sst [smem:[#allocation15_spill]] %s1268_s25  ;;  %p966_p3 = por %p49_p2, %p48_p1 }
  0x14   : > { %p1227_p4 = scmp.ne.s32.totalorder %s837_s16, %s833_s15  ;;  %p36_p5 = scmp.ge.s32.totalorder %s1270_s26, 2 }
  0x15   : > { %p972_p6 = scmp.eq.s32.totalorder %s512_s23, 0  ;;  %s64_s30 = ssub.s32 %s853_s20, %s1268_s25 }
  0x16   : > { %s67_s4 = sadd.s32 1, %s829_s14  ;;  %s1272_s26 = smov (%p36_p5, %s1270_s26), 0 }
  0x17   : > { %1241 = sst [smem:[#allocation16_spill]] %s1272_s26  ;;  %p986_p7 = por %p972_p6, %p1227_p4 }
  0x18   : > { %p65_p8 = scmp.eq.s32.totalorder %s64_s30, 0  ;;  %s38_s6 = ssub.s32 %s857_s21, %s1272_s26 }
  0x19   : > { %s1242_s5 = scalar_select %p986_p7, 1, 0 }
  0x1a   : > { %p74_p9 = scmp.ne.s32.totalorder %s829_s14, %s825_s13  ;;  %p39_p10 = scmp.eq.s32.totalorder %s38_s6, 0 }
  0x1b   : > { %p80_p11 = scmp.ne.s32.totalorder %s825_s13, %s821_s12  ;;  %p130_p0 = scmp.eq.s32.totalorder %s512_s23, 7 }
  0x1c   : > { %s997_s7 = scalar_select %p65_p8, %s829_s14, %s67_s4  }
  0x1d   : > { %s1000_s8 = scalar_select %p39_p10, %s841_s17, %s41_s27  }
  0x1e   : > { %p1004_p12 = por %p74_p9, %p49_p2  ;;  %p1010_p13 = por %p80_p11, %p972_p6 }
  0x1f   : > { %p136_p5 = scmp.eq.s32.totalorder %s513_s24, 7  ;;  %p566_p4 = scmp.lt.s32.totalorder %s861_s22, 8 }
  0x20   : > { %s1244_s10 = scalar_select %p1010_p13, 1, 0 }
  0x21   : > { %p1018_p8 = por %p130_p0, %p48_p1  ;;  %p1246_p10 = scmp.ne.s32.totalorder %s837_s16, %s833_s15 }
  0x22   : > { %s156_s27 = sand.u32 1, %s841_s17   ;;  %s517_s29 = sshll.u32 %s857_s21, 6 }
  0x23   : > { %s1245_s11 = scalar_select %p1018_p8, 1, 0 }
  0x24   : > { %p1025_p2 = por %p136_p5, %p1246_p10  ;;  %s516_s30 = sshll.u32 %s156_s27, 2 }
  0x25   : > { %s1248_s0 = sld [smem:[#allocation17_spill]]  ;;  %s160_s23 = scalar_lea.vmem [#allocation4], %s516_s30 }
  0x26   : > { %s1247_s12 = scalar_select %p1025_p2, 1, 0 }
  0x27   : > { %s167_s24 = sshll.u32 %s160_s23, 4  ;;  %p1038_p1 = pnand %p566_p4, %p966_p3  ;;  %s1042_s24 = int_to_ptr.vmem [resolvable:$true] %s167_s24 }
  0x28   : > { %p1046_p6 = pnand %p566_p4, %p1004_p12 }
  0x29   : > { %p677_p0 = pneg %p1038_p1 }
  0x2b   : > { %s1034_s26 = scalar_lea.hbm %s1248_s0, %s517_s29  ;;  %s157_s29 = scalar_lea.sflag [#allocation5], %s156_s27 }
  0x2c   : > { %s675_s6 = scalar_lea.hbm %s1034_s26, 64  ;;  %s680_s23 = scalar_lea.hbm %s1248_s0, 128 }
  0x2d   : > { %p676_p11 = scmp.ne.s32.totalorder %s1034_s26, %s675_s6  ;;  %p681_p4 = scmp.lt.u32.totalorder %s1034_s26, %s1248_s0 }
  0x2e   : > { %p682_p12 = scmp.lt.u32.totalorder %s680_s23, %s675_s6  ;;  %p684_p9 = scmp.lt.u32.totalorder %s675_s6, %s1034_s26 }
  0x2f   : > { %p678_p3 = pnand %p677_p0, %p676_p11 }
  0x30   : > { %p683_p10 = por %p682_p12, %p681_p4 }
  0x31   : > { %p679_p5 = pneg %p678_p3 }
  0x32   : > { %p685_p2 = por %p684_p9, %p683_p10 }
  0x34   : > { %p686_p8 = pnand %p685_p2, %p679_p5 }
  0x36   : > { %689 = shalt.err (!%p686_p8)
}
  0x37   : > { %s690_s27 = scalar_lea.vmem %s1042_s24, 64  ;;  %s863_s28 = smov [#allocation4]  }
  0x38   : > { %p691_p11 = scmp.ne.s32.totalorder %s1042_s24, %s690_s27  ;;  %s695_s30 = sshll.u32 %s863_s28, 4  ;;  %s696_s30 = int_to_ptr.vmem [resolvable:$false] %s695_s30 }
  0x39   : > { %s697_s21 = scalar_lea.vmem %s696_s30, 128  ;;  %p698_p7 = scmp.lt.s32.totalorder %s1042_s24, %s696_s30 }
  0x3a   : > { %p693_p3 = pnand %p691_p11, %p677_p0  ;;  %p699_p4 = scmp.lt.s32.totalorder %s697_s21, %s690_s27 }
  0x3c   : > { %p694_p13 = pneg %p693_p3  ;;  %p700_p12 = por %p699_p4, %p698_p7 }
  0x3e   : > { %p701_p9 = pnand %p700_p12, %p694_p13 }
  0x40   : > { %704 = shalt.err (!%p701_p9)
}
  0x41   : > { %558 = dma.hbm_to_vmem [thread:$0]  (!%p1038_p1), %s1034_s26, 64, %s1042_s24, %s157_s29  }
  0x42   : > { %p198_p8 = scmp.lt.s32.totalorder %s861_s22, 9  ;;  %s174_s6 = sand.u32 1, %s829_s14  }
  0x43   : > { %s519_s23 = sshll.u32 %s853_s20, 6  ;;  %p1251_p2 = scmp.ge.s32.totalorder %s861_s22, 1 }
  0x44   : > { %s518_s27 = sshll.u32 %s174_s6, 4  ;;  %s1088_s30 = scalar_lea.hbm %s1224_s1, %s519_s23 }
  0x45   : > { %p1081_p0 = pnand %p1251_p2, %p198_p8  ;;  %s178_s21 = scalar_lea.vmem [#allocation7], %s518_s27 }
  0x46   : > { %s184_s26 = sshll.u32 %s178_s21, 4  ;;  %s1092_s24 = scalar_lea.sflag [#allocation8], %s174_s6  ;;  %s1090_s26 = int_to_ptr.vmem [resolvable:$true] %s184_s26 }
  0x47   : > { %s705_s29 = scalar_lea.hbm %s1088_s30, 256  ;;  %p707_p13 = pneg %p1046_p6 }
  0x48   : > { %p706_p7 = scmp.ne.s32.totalorder %s1088_s30, %s705_s29  ;;  %s710_s25 = scalar_lea.hbm %s1224_s1, 1024 }
  0x49   : > { %p711_p10 = scmp.lt.u32.totalorder %s1088_s30, %s1224_s1  ;;  %p712_p11 = scmp.lt.u32.totalorder %s710_s25, %s705_s29 }
  0x4a   : > { %p708_p1 = pnand %p707_p13, %p706_p7  ;;  %p714_p4 = scmp.lt.u32.totalorder %s705_s29, %s1088_s30 }
  0x4b   : > { %p713_p3 = por %p712_p11, %p711_p10 }
  0x4c   : > { %p709_p5 = pneg %p708_p1 }
  0x4d   : > { %p715_p12 = por %p714_p4, %p713_p3 }
  0x4f   : > { %p716_p9 = pnand %p715_p12, %p709_p5 }
  0x51   : > { %719 = shalt.err (!%p716_p9)
}
  0x52   : > { %s720_s6 = scalar_lea.vmem %s1090_s26, 256  ;;  %s864_s27 = smov [#allocation7]  }
  0x53   : > { %p721_p8 = scmp.ne.s32.totalorder %s1090_s26, %s720_s6  ;;  %s725_s21 = sshll.u32 %s864_s27, 4  ;;  %s726_s21 = int_to_ptr.vmem [resolvable:$false] %s725_s21 }
  0x54   : > { %s727_s0 = scalar_lea.vmem %s726_s21, 512  ;;  %p728_p1 = scmp.lt.s32.totalorder %s1090_s26, %s726_s21 }
  0x55   : > { %p723_p2 = pnand %p721_p8, %p707_p13  ;;  %p729_p10 = scmp.lt.s32.totalorder %s727_s0, %s720_s6 }
  0x57   : > { %p724_p7 = pneg %p723_p2  ;;  %p730_p11 = por %p729_p10, %p728_p1 }
  0x59   : > { %p731_p3 = pnand %p730_p11, %p724_p7 }
  0x5b   : > { %734 = shalt.err (!%p731_p3)
}
  0x5c   : > { %s865_s20 = smov 256   ;;  %s866_s29 = smov 64  }
  0x5d   : > { %s867_s23 = smov 4   ;;  %202 = sbr.rel (%p1081_p0) target bundleno = 949 (0x3b5), region = 32 }
  0x5e   : > { %561 = dma.hbm_to_vmem [thread:$0]  (!%p1046_p6), %s1088_s30, 256, %s1090_s26, %s1092_s24, %s865_s20, %s866_s29, %s867_s23  }
  0x5f   : > { %s1123_s28 = sand.u32 (!%p1081_p0), 1, %s837_s16   ;;  %p1253_p13 = scmp.ne.s32.totalorder (!%p1081_p0), %s1242_s5, 0 }
  0x60   : > { %s521_s25 = sshll.u32 (!%p1081_p0), %s1123_s28, 2  ;;  %s205_s6 = scalar_lea.sflag (!%p1081_p0), [#allocation5], %s1123_s28 }
  0x61   : > { %s1127_s27 = scalar_lea.vmem (!%p1081_p0), [#allocation4], %s521_s25 }
  0x64   : > { %808 = dma.done.wait (%p1253_p13), %s205_s6, 64  }
  0x65   : > { %810 = vsyncadd (%p1253_p13), %s205_s6, 4294967232  ;;  %s213_s4 = sand.u32 1, %s825_s13   ;;  %p1254_p6 = scmp.ne.s32.totalorder %s1244_s10, 0 }
  0x66   : > { %s522_s9 = sshll.u32 %s213_s4, 4  ;;  %s214_s30 = scalar_lea.sflag [#allocation8], %s213_s4 }
  0x67   : > { %s217_s26 = scalar_lea.vmem [#allocation7], %s522_s9 }
  0x68   : > { %812 = dma.done.wait (%p1254_p6), %s214_s30, 256  }
  0x69   : > { %814 = vsyncadd (%p1254_p6), %s214_s30, 4294967040  ;;  %s523_s24 = sshll.u32 %s1123_s28, 5  ;;  %p248_p0 = scmp.lt.s32.totalorder %s845_s18, 3 }
  0x6a   : > { %s1144_s29 = scalar_lea.vmem [#allocation9], %s523_s24  ;;  %p524_p5 = scmp.ne.s32.totalorder %s845_s18, 0 }
  0x6b   : > { %s249_s21 = scalar_select %p248_p0, %s845_s18, 3 }
  0x6c   : > { %255 = sbr.rel (%p524_p5) target bundleno = 115 (0x73), region = 44  ;;  %vm256_vm0 = vcmask (!%p524_p5), 7168   ;;  %v868_v0 = vmov (!%p524_p5), -inf   ;;  %v869_v1 = vmov (!%p524_p5), 0.0  }
  0x6d   : > { %s250_s20 = scalar_lea.vmem %s1225_s2, %s249_s21  ;;  %257 = vst.msk [vmem:[#allocation2] sm:$0xff] (!%p524_p5), %vm256_vm0, %v868_v0  ;;  %258 = vst.msk [vmem:[#allocation3] sm:$0xff] (!%p524_p5), %vm256_vm0, %v869_v1 }
  0x73 PF: > { %v666_v2 = vld [vmem:[%s217_s26] sm:$0xff]   ;;  %v870_v3 = vmov 0.0   ;;  %v667_v4 = vld [vmem:[%s217_s26 + $0x8] sm:$0xff]   ;;  %vm871_vm1 = vmmov 0   ;;  %vm283_vm2 = vcmask 261120   ;;  %s529_s10 = sshll.u32 %s845_s18, 7 }
  0x74   : > { %541 = vmatprep.subr.bf16.mxu0 %v870_v3  ;;  %545 = vmatprep.mubr.msk.bf16.mxu0 %vm871_vm1, %v870_v3  ;;  %v259_v5 = vld [vmem:[%s1127_s27] sm:$0xf]  ;;  %s351_s23 = sshra.s32 %s529_s10, 7  ;;  %v525_v6 = vld [vmem:[%s250_s20] ss:$0 sm:$0xff]  ;;  %v872_v12 = vmov 0  }
  0x75   : > { %542 = vmatpush3.bf16.msra.mxu0 %v666_v2  ;;  %s530_s25 = sshll.u32 %s351_s23, 3  ;;  %665 = vset.pattern.permute.xlu0 %v872_v12  ;;  %v327_v13 = vld [vmem:[#allocation2] sm:$0xff]  ;;  %vm347_vm3 = vcmask 7168   ;;  %v334_v23 = vld [vmem:[#allocation3] sm:$0xff]  ;;  %p531_p4 = scmp.ne.s32.totalorder %s845_s18, 3 }
  0x76   : > { %543 = vmatprep.subr.bf16.mxu0 %v870_v3  ;;  %s354_s6 = scalar_lea.vmem %s1144_s29, %s530_s25 [#allocation9]  ;;  %v873_v28 = vmov (!%p531_p4), 0  }
  0x79   : > { %544 = vmatpush3.bf16.msra.mxu0 %v667_v4 }
  0x7c   : > { %546 = vmatmul.mubr.msk.bf16.vlgmr.msra.gmra.mrb[0].mxu0 %vm283_vm2, %v259_v5 }
 0x14f   : > { %v321_v7 = vpop.f32.mrb[0].mxu0 }
 0x150   : > { %v322_v8 = vadd.f32 %v525_v6, %v321_v7  ;;  %v547_v9 = vpop.f32.mrb[1].mxu0 }
 0x151   : > { %v324_v10 = vpop.f32.mrb[2].mxu0 }
 0x152   : > { %355 = vst [vmem:[%s354_s6] sm:$0xff] %v322_v8  ;;  %328 = vmax.xlane.f32.xlu0 %v322_v8  ;;  %v548_v11 = vpop.f32.mrb[3].mxu0 }
 0x159   : > { %v365_v33 = vld [vmem:[%s1144_s29] sm:$0xff] (!%p531_p4)  ;;  %v366_v34 = vld [vmem:[%s1144_s29 + $0x8] sm:$0xff] (!%p531_p4)  ;;  %v367_v35 = vld [vmem:[%s1144_s29 + $0x10] sm:$0xff] (!%p531_p4) }
 0x15a   : > { %v368_v36 = vld [vmem:[%s1144_s29 + $0x18] sm:$0xff] (!%p531_p4) }
 0x1df   : > { %v329_v14 = vpop.xlane.xlu0 %328 }
 0x1e0   : > { %v330_v15 = vmax.f32 %v327_v13, %v329_v14 }
 0x1e2   : > { %v331_v16 = vsub.f32 %v327_v13, %v330_v15  ;;  %349 = vst.msk [vmem:[#allocation2] sm:$0xff] %vm347_vm3, %v330_v15  ;;  %338 = vperm.xlu0 %665, %v330_v15  }
 0x1e4   : > { %v332_v21 = vmul.f32 1.442695, %v331_v16 }
 0x1e6   : > { %672 = vset.pattern.permute.xlu0 (!%p531_p4), %v873_v28 }
 0x1e9   : > { %v360_v30 = vld [vmem:[#allocation2] sm:$0xff] (!%p531_p4) }
 0x261   : > { %v339_v17 = vpop.permute.xlu0 %338 }
 0x262   : > { %v341_v18 = vsub.f32 %v322_v8, %v339_v17 }
 0x264   : > { %v342_v19 = vmul.f32 1.442695, %v341_v18 }
 0x266   : > { %668 = vpow2.f32 %v342_v19 }
 0x267   : > { %670 = vpow2.f32 %v332_v21 }
 0x270   : > { %v669_v20 = vpop.eup %668 }
 0x271   : > { %344 = vadd.xlane.f32.xlu1 %v669_v20  ;;  %v671_v22 = vpop.eup %670 }
 0x272   : > { %v335_v24 = vmul.f32 %v671_v22, %v334_v23 }
 0x2fb   : > { %359 = sbr.rel (%p531_p4) target bundleno = 924 (0x39c), region = 48 }
 0x2fe   : > { %v345_v25 = vpop.xlane.xlu1 %344 }
 0x2ff   : > { %v346_v26 = vadd.f32 %v345_v25, %v335_v24 }
 0x301   : > { %348 = vst.msk [vmem:[#allocation3] sm:$0xff] %vm347_vm3, %v346_v26 }
 0x308   : > { %v361_v27 = vld [vmem:[#allocation3] sm:$0xff] }
 0x309   : > { %673 = vlog2.f32 %v361_v27 }
 0x313   : > { %v674_v29 = vpop.eup %673 }
 0x314   : > { %v363_v31 = vmul.f32 0.6931472, %v674_v29 }
 0x316   : > { %v364_v32 = vadd.f32 %v363_v31, %v360_v30 }
 0x318   : > { %371 = vperm.xlu0 %672, %v364_v32  }
 0x397   : > { %v372_v37 = vpop.permute.xlu0 %371 }
 0x398   : > { %v374_v38 = vsub.f32 %v365_v33, %v372_v37  ;;  %v375_v39 = vsub.f32 %v366_v34, %v372_v37  ;;  %v376_v40 = vsub.f32 %v367_v35, %v372_v37  ;;  %v377_v41 = vsub.f32 %v368_v36, %v372_v37 }
 0x39a   : > { %378 = vst [vmem:[%s1144_s29] sm:$0xff] %v374_v38  ;;  %379 = vst [vmem:[%s1144_s29 + $0x8] sm:$0xff] %v375_v39 }
 0x39b   : > { %380 = vst [vmem:[%s1144_s29 + $0x10] sm:$0xff] %v376_v40  ;;  %381 = vst [vmem:[%s1144_s29 + $0x18] sm:$0xff] %v377_v41 }
 0x39c PF: > { %s537_s18 = sshll.u32 %s849_s19, 9  ;;  %s397_s30 = sshll.u32 %s1144_s29, 4  ;;  %s398_s30 = int_to_ptr.vmem [resolvable:$true] %s397_s30 }
 0x39d   : > { %s1165_s9 = scalar_lea.hbm %s1226_s3, %s537_s18  ;;  %s383_s26 = scalar_lea.sflag [#allocation6], %s1123_s28 }
 0x39e   : > { %s735_s24 = scalar_lea.vmem %s398_s30, 512  ;;  %p1255_p9 = scmp.ne.s32.totalorder %s1245_s11, 0 }
 0x39f   : > { %p736_p12 = scmp.ne.s32.totalorder %s398_s30, %s735_s24  ;;  %s874_s21 = smov [#allocation9]  }
 0x3a0   : > { %s739_s0 = sshll.u32 %s874_s21, 4  ;;  %s740_s0 = int_to_ptr.vmem [resolvable:$false] %s739_s0 }
 0x3a1   : > { %p737_p8 = pnand %p736_p12, %p1255_p9  ;;  %s741_s5 = scalar_lea.vmem %s740_s0, 1024 }
 0x3a2   : > { %p742_p7 = scmp.lt.s32.totalorder %s398_s30, %s740_s0  ;;  %p743_p1 = scmp.lt.s32.totalorder %s741_s5, %s735_s24 }
 0x3a3   : > { %p738_p2 = pneg %p737_p8 }
 0x3a4   : > { %p744_p10 = por %p743_p1, %p742_p7 }
 0x3a6   : > { %p745_p11 = pnand %p744_p10, %p738_p2 }
 0x3a8   : > { %748 = shalt.err (!%p745_p11)
}
 0x3a9   : > { %s749_s19 = scalar_lea.hbm %s1165_s9, 512  ;;  %s753_s29 = scalar_lea.hbm %s1226_s3, 1024 }
 0x3aa   : > { %p750_p3 = scmp.ne.s32.totalorder %s1165_s9, %s749_s19  ;;  %p754_p0 = scmp.lt.u32.totalorder %s1165_s9, %s1226_s3 }
 0x3ab   : > { %p755_p5 = scmp.lt.u32.totalorder %s753_s29, %s749_s19  ;;  %p757_p12 = scmp.lt.u32.totalorder %s749_s19, %s1165_s9 }
 0x3ac   : > { %p751_p13 = pnand %p750_p3, %p1255_p9 }
 0x3ad   : > { %p756_p4 = por %p755_p5, %p754_p0 }
 0x3ae   : > { %p752_p6 = pneg %p751_p13 }
 0x3af   : > { %p758_p8 = por %p757_p12, %p756_p4 }
 0x3b1   : > { %p759_p2 = pnand %p758_p8, %p752_p6 }
 0x3b3   : > { %762 = shalt.err (!%p759_p2)
}
 0x3b4   : > { %553 = dma.vmem_to_hbm [thread:$0]  (%p1255_p9), %s398_s30, 512, %s1165_s9, %s383_s26  }
 0x3b5 PF: > { %p567_p7 = scmp.ge.s32.totalorder %s861_s22, 2  ;;  %s409_s25 = sand.u32 1, %s833_s15  }
 0x3b6   : > { %p1256_p1 = scmp.ne.s32.totalorder %s1247_s12, 0  ;;  %s410_s6 = scalar_lea.sflag [#allocation6], %s409_s25 }
 0x3b8   : > { %p563_p10 = pnand %p567_p7, %p1256_p1 }
 0x3ba   : > { %816 = dma.done.wait (!%p563_p10), %s410_s6, 512  }
 0x3bb   : > { %818 = vsyncadd (!%p563_p10), %s410_s6, 4294966784  ;;  %s22_s22 = sadd.s32 1, %s861_s22   ;;  %s1257_s18 = sld [smem:[#allocation13_spill]] }
 0x3bc   : > { %p19_p11 = scmp.ge.s32.totalorder %s22_s22, 10   ;;  %s1258_s19 = sld [smem:[#allocation14_spill]] }
 0x3bd   : > { %s1259_s20 = sld [smem:[#allocation15_spill]]  ;;  %s1260_s21 = sld [smem:[#allocation16_spill]] }
 0x3be   : > { %s1261_s12 = smov %s825_s13  ;;  %s1262_s13 = smov %s829_s14 }
 0x3bf   : > { %s1263_s14 = smov %s997_s7  ;;  %s1264_s15 = smov %s837_s16 }
 0x3c0   : > { %s1265_s16 = smov %s841_s17  ;;  %s1266_s17 = smov %s1000_s8 }
 0x3c1   :  { %21 = sbr.rel (!%p19_p11) target bundleno = 13 (0xd), region = 102 }
 0x3c8   :  { %415 = vsyncpa [#allocation5], 1 }
 0x3c9   :  { %417 = vsyncpa [#allocation5 + $0x1], 1 }
 0x3ca   :  { %418 = vsyncpa [#allocation8], 1 }
 0x3cb   :  { %420 = vsyncpa [#allocation8 + $0x1], 1 }
 0x3cc   :  { %421 = vsyncpa [#allocation6], 1 }
 0x3cd   :  { %423 = vsyncpa [#allocation6 + $0x1], 1 }

</bundles_post_ra>
